<compile_context>
chip_gen: v6e
topology: v6e:2x2x1
jax: 0.10.0
libtpu: 0.0.40
codegen_flags: <defaults>
</compile_context>

<pallas_src>
import jax
import jax.numpy as jnp
from jax.experimental import pallas as pl
from jax.experimental.pallas import tpu as pltpu

LEAKY_SLOPE = 0.01  # PyTorch nn.LeakyReLU default negative_slope

IN_DIM, H1_DIM, H2_DIM, OUT_DIM = 784, 250, 100, 10
PAD_H1, PAD_H2, PAD_OUT = 256, 128, 128  # lane(128)-aligned hidden / logit widths
NEG_BIG = -1e30


def _round_up(x, m):
    return ((x + m - 1) // m) * m


def _leaky_relu(x):
    return jnp.where(x > 0, x, LEAKY_SLOPE * x)


def mlp_kernel(x_ref, w1_ref, b1_ref, w2_ref, b2_ref, w3_ref, b3_ref, o_ref):
    # x arrives in its native dtype (f32 here); cast to bf16 in VMEM — free compared
    # with a separate HBM pad/cast pass.  Weights are bf16, biases f32; all matmuls
    # accumulate in f32 on the MXU, epilogue stays f32 (safe on v5e's f32-only VPU).
    x = x_ref[...].astype(jnp.bfloat16)                                   # (TB, 784)

    # L1: (TB,784) @ (784,256)
    h1 = jnp.dot(x, w1_ref[...], preferred_element_type=jnp.float32) + b1_ref[...]
    h1 = _leaky_relu(h1)

    # L2: (TB,256) @ (256,128)
    h2 = jnp.dot(h1.astype(jnp.bfloat16), w2_ref[...],
                 preferred_element_type=jnp.float32) + b2_ref[...]
    h2 = _leaky_relu(h2)

    # L3: (TB,128) @ (128,128) -> padded logits
    logits = jnp.dot(h2.astype(jnp.bfloat16), w3_ref[...],
                     preferred_element_type=jnp.float32) + b3_ref[...]

    # Kill padded logit columns (>= 10) with a large finite negative (no inf math).
    col = jax.lax.broadcasted_iota(jnp.int32, logits.shape, 1)
    logits = jnp.where(col < OUT_DIM, logits, NEG_BIG)

    # Numerically stable log_softmax over dim=1 (cross-lane max/sum -> XLU, exp/log -> EUP).
    m = jnp.max(logits, axis=1, keepdims=True)
    shifted = logits - m
    lse = jnp.log(jnp.sum(jnp.exp(shifted), axis=1, keepdims=True))
    logp = shifted - lse

    # Store only the 10 real classes (40 B/row) — no wrapper slice pass afterwards.
    o_ref[...] = logp[:, :OUT_DIM].astype(o_ref.dtype)


def prepare_params(w1, b1, w2, b2, w3, b3):
    """Pad weights to lane-aligned output widths and cast to bf16 once (off the hot path).
    w1 is padded only on its output columns so x can be consumed unpadded (K=784)."""
    def pad_w(w, rows, cols):
        out = jnp.zeros((rows, cols), jnp.float32).at[: w.shape[0], : w.shape[1]].set(w)
        return out.astype(jnp.bfloat16)

    def pad_b(b, cols):
        b = jnp.ravel(b)
        return jnp.zeros((1, cols), jnp.float32).at[0, : b.shape[0]].set(b)

    return (
        pad_w(w1, IN_DIM, PAD_H1), pad_b(b1, PAD_H1),
        pad_w(w2, PAD_H1, PAD_H2), pad_b(b2, PAD_H2),
        pad_w(w3, PAD_H2, PAD_OUT), pad_b(b3, PAD_OUT),
    )


def mlp_forward(x, w1p, b1p, w2p, b2p, w3p, b3p, *, max_tile_b=512):
    """x: (B, 784) f32 (or bf16).  Returns (B, 10) f32 log-probabilities."""
    B, D = x.shape
    assert D == IN_DIM
    # Up-to-512-row batch tiles; small batches get one sublane-rounded tile.
    # Large batches (>=1024) automatically keep >=2 grid steps (v7x dual-TC sharding).
    tile_b = min(max_tile_b, _round_up(B, 8))
    grid = (pl.cdiv(B, tile_b),)

    resident = lambda shape: pl.BlockSpec(shape, lambda i: (0, 0))  # weights stay in VMEM

    flops = 2 * B * (IN_DIM * PAD_H1 + PAD_H1 * PAD_H2 + PAD_H2 * PAD_OUT)
    bytes_accessed = (
        x.size * x.dtype.itemsize
        + (w1p.size + w2p.size + w3p.size) * 2
        + (b1p.size + b2p.size + b3p.size) * 4
        + B * OUT_DIM * 4
    )

    out = pl.pallas_call(
        mlp_kernel,
        out_shape=jax.ShapeDtypeStruct((B, OUT_DIM), jnp.float32),
        grid=grid,
        in_specs=[
            pl.BlockSpec((tile_b, IN_DIM), lambda i: (i, 0)),   # x streamed per batch tile
            resident((IN_DIM, PAD_H1)), resident((1, PAD_H1)),
            resident((PAD_H1, PAD_H2)), resident((1, PAD_H2)),
            resident((PAD_H2, PAD_OUT)), resident((1, PAD_OUT)),
        ],
        out_specs=pl.BlockSpec((tile_b, OUT_DIM), lambda i: (i, 0)),
        compiler_params=pltpu.CompilerParams(dimension_semantics=("parallel",)),
        cost_estimate=pl.CostEstimate(
            flops=flops,
            transcendentals=B * (PAD_OUT + 1),
            bytes_accessed=bytes_accessed,
        ),
    )(x, w1p, b1p, w2p, b2p, w3p, b3p)

    return out


def init_params(key):
    """Deterministic PyTorch-style (uniform fan-in) init, weights stored (in, out)."""
    def linear(key, fan_in, fan_out):
        k_w, k_b = jax.random.split(key)
        bound = 1.0 / jnp.sqrt(fan_in)
        w = jax.random.uniform(k_w, (fan_in, fan_out), jnp.float32, -bound, bound)
        b = jax.random.uniform(k_b, (fan_out,), jnp.float32, -bound, bound)
        return w, b

    k1, k2, k3 = jax.random.split(key, 3)
    w1, b1 = linear(k1, IN_DIM, H1_DIM)
    w2, b2 = linear(k2, H1_DIM, H2_DIM)
    w3, b3 = linear(k3, H2_DIM, OUT_DIM)
    return w1, b1, w2, b2, w3, b3


def reference_forward(x, w1, b1, w2, b2, w3, b3):
    """Pure-JAX reference using the same bf16-quantized operands (f32 math)."""
    q = lambda a: a.astype(jnp.bfloat16).astype(jnp.float32)
    h1 = _leaky_relu(q(x) @ q(w1) + b1)
    h2 = _leaky_relu(q(h1) @ q(w2) + b2)
    logits = q(h2) @ q(w3) + b3
    return jax.nn.log_softmax(logits, axis=1)


if __name__ == "__main__":
    key = jax.random.PRNGKey(0)
    k_params, k_x, k_x2 = jax.random.split(key, 3)

    w1, b1, w2, b2, w3, b3 = init_params(k_params)
    params_p = prepare_params(w1, b1, w2, b2, w3, b3)

    # Small batch, exact tile.
    B = 8
    x = jax.random.normal(k_x, (B, IN_DIM), dtype=jnp.float32)
    out = jax.block_until_ready(mlp_forward(x, *params_p))
    assert out.shape == (B, OUT_DIM)

    # log_softmax rows should sum (in prob space) to ~1
    row_sums = jnp.sum(jnp.exp(out), axis=1)
    assert bool(jnp.all(jnp.abs(row_sums - 1.0) < 1e-3))

    ref = reference_forward(x, w1, b1, w2, b2, w3, b3)
    assert bool(jnp.all(jnp.abs(out - ref) < 3e-2))

    # Ragged batch (not a tile multiple): exercises the cdiv grid + dropped OOB rows.
    B2 = 20
    x2 = jax.random.normal(k_x2, (B2, IN_DIM), dtype=jnp.float32)
    out2 = jax.block_until_ready(mlp_forward(x2, *params_p))
    assert out2.shape == (B2, OUT_DIM)
    ref2 = reference_forward(x2, w1, b1, w2, b2, w3, b3)
    assert bool(jnp.all(jnp.abs(out2 - ref2) < 3e-2))

    print("KERNEL_OK")
</pallas_src>

<mosaic_0001>
module attributes {stable_mosaic.version = 11 : i64} {
  func.func @mlp_kernel(%arg0: i32, %arg1: memref<8x784xf32, #tpu.memory_space<vmem>>, %arg2: memref<784x256xbf16, #tpu.memory_space<vmem>>, %arg3: memref<1x256xf32, #tpu.memory_space<vmem>>, %arg4: memref<256x128xbf16, #tpu.memory_space<vmem>>, %arg5: memref<1x128xf32, #tpu.memory_space<vmem>>, %arg6: memref<128x128xbf16, #tpu.memory_space<vmem>>, %arg7: memref<1x128xf32, #tpu.memory_space<vmem>>, %arg8: memref<8x10xf32, #tpu.memory_space<vmem>>) attributes {dimension_semantics = [#tpu.dimension_semantics<parallel>], iteration_bounds = array<i64: 1>, scalar_prefetch = 0 : i64, scratch_operands = 0 : i64, tpu.core_type = #tpu.core_type<tc>, window_params = [{transform_indices = @transform_0, window_bounds = array<i64: 8, 784>}, {pipeline_mode = #tpu.pipeline_mode<synchronous>, transform_indices = @transform_1, window_bounds = array<i64: 784, 256>}, {pipeline_mode = #tpu.pipeline_mode<synchronous>, transform_indices = @transform_2, window_bounds = array<i64: 1, 256>}, {pipeline_mode = #tpu.pipeline_mode<synchronous>, transform_indices = @transform_3, window_bounds = array<i64: 256, 128>}, {pipeline_mode = #tpu.pipeline_mode<synchronous>, transform_indices = @transform_4, window_bounds = array<i64: 1, 128>}, {pipeline_mode = #tpu.pipeline_mode<synchronous>, transform_indices = @transform_5, window_bounds = array<i64: 128, 128>}, {pipeline_mode = #tpu.pipeline_mode<synchronous>, transform_indices = @transform_6, window_bounds = array<i64: 1, 128>}, {transform_indices = @transform_7, window_bounds = array<i64: 8, 10>}]} {
    %c0 = arith.constant 0 : index
    %c0_0 = arith.constant 0 : index
    %0 = vector.load %arg1[%c0, %c0_0] : memref<8x784xf32, #tpu.memory_space<vmem>>, vector<8x784xf32>
    %1 = arith.truncf %0 : vector<8x784xf32> to vector<8x784xbf16>
    %c0_1 = arith.constant 0 : index
    %c0_2 = arith.constant 0 : index
    %2 = vector.load %arg2[%c0_1, %c0_2] : memref<784x256xbf16, #tpu.memory_space<vmem>>, vector<784x256xbf16>
    %cst = arith.constant dense<0.000000e+00> : vector<8x256xf32>
    %3 = tpu.matmul %1, %2, %cst {dimension_numbers = #tpu.dot_dimension_numbers<[1], [0], [0], [1], [0, 0, 1, 1], [], []>} : vector<8x784xbf16>, vector<784x256xbf16>, vector<8x256xf32> -> vector<8x256xf32>
    %c0_3 = arith.constant 0 : index
    %c0_4 = arith.constant 0 : index
    %4 = vector.load %arg3[%c0_3, %c0_4] : memref<1x256xf32, #tpu.memory_space<vmem>>, vector<1x256xf32>
    %5 = vector.broadcast %4 : vector<1x256xf32> to vector<8x256xf32>
    %6 = arith.addf %3, %5 : vector<8x256xf32>
    %cst_5 = arith.constant 0.000000e+00 : f32
    %7 = vector.broadcast %cst_5 : f32 to vector<8x256xf32>
    %8 = arith.cmpf ogt, %6, %7 : vector<8x256xf32>
    %cst_6 = arith.constant 0.00999999977 : f32
    %9 = vector.broadcast %cst_6 : f32 to vector<8x256xf32>
    %10 = arith.mulf %9, %6 : vector<8x256xf32>
    %11 = arith.select %8, %6, %10 : vector<8x256xi1>, vector<8x256xf32>
    %12 = arith.truncf %11 : vector<8x256xf32> to vector<8x256xbf16>
    %c0_7 = arith.constant 0 : index
    %c0_8 = arith.constant 0 : index
    %13 = vector.load %arg4[%c0_7, %c0_8] : memref<256x128xbf16, #tpu.memory_space<vmem>>, vector<256x128xbf16>
    %cst_9 = arith.constant dense<0.000000e+00> : vector<8x128xf32>
    %14 = tpu.matmul %12, %13, %cst_9 {dimension_numbers = #tpu.dot_dimension_numbers<[1], [0], [0], [1], [0, 0, 1, 1], [], []>} : vector<8x256xbf16>, vector<256x128xbf16>, vector<8x128xf32> -> vector<8x128xf32>
    %c0_10 = arith.constant 0 : index
    %c0_11 = arith.constant 0 : index
    %15 = vector.load %arg5[%c0_10, %c0_11] : memref<1x128xf32, #tpu.memory_space<vmem>>, vector<1x128xf32>
    %16 = vector.broadcast %15 : vector<1x128xf32> to vector<8x128xf32>
    %17 = arith.addf %14, %16 : vector<8x128xf32>
    %cst_12 = arith.constant 0.000000e+00 : f32
    %18 = vector.broadcast %cst_12 : f32 to vector<8x128xf32>
    %19 = arith.cmpf ogt, %17, %18 : vector<8x128xf32>
    %cst_13 = arith.constant 0.00999999977 : f32
    %20 = vector.broadcast %cst_13 : f32 to vector<8x128xf32>
    %21 = arith.mulf %20, %17 : vector<8x128xf32>
    %22 = arith.select %19, %17, %21 : vector<8x128xi1>, vector<8x128xf32>
    %23 = arith.truncf %22 : vector<8x128xf32> to vector<8x128xbf16>
    %c0_14 = arith.constant 0 : index
    %c0_15 = arith.constant 0 : index
    %24 = vector.load %arg6[%c0_14, %c0_15] : memref<128x128xbf16, #tpu.memory_space<vmem>>, vector<128x128xbf16>
    %cst_16 = arith.constant dense<0.000000e+00> : vector<8x128xf32>
    %25 = tpu.matmul %23, %24, %cst_16 {dimension_numbers = #tpu.dot_dimension_numbers<[1], [0], [0], [1], [0, 0, 1, 1], [], []>} : vector<8x128xbf16>, vector<128x128xbf16>, vector<8x128xf32> -> vector<8x128xf32>
    %c0_17 = arith.constant 0 : index
    %c0_18 = arith.constant 0 : index
    %26 = vector.load %arg7[%c0_17, %c0_18] : memref<1x128xf32, #tpu.memory_space<vmem>>, vector<1x128xf32>
    %27 = vector.broadcast %26 : vector<1x128xf32> to vector<8x128xf32>
    %28 = arith.addf %25, %27 : vector<8x128xf32>
    %29 = tpu.iota {dimensions = array<i32: 1>} : vector<8x128xi32>
    %c10_i32 = arith.constant 10 : i32
    %30 = vector.broadcast %c10_i32 : i32 to vector<8x128xi32>
    %31 = arith.cmpi slt, %29, %30 : vector<8x128xi32>
    %cst_19 = arith.constant -1.000000e+30 : f32
    %32 = vector.broadcast %cst_19 : f32 to vector<8x128xf32>
    %33 = arith.select %31, %28, %32 : vector<8x128xi1>, vector<8x128xf32>
    %cst_20 = arith.constant dense<0xFF800000> : vector<8xf32>
    %34 = vector.multi_reduction <maximumf>, %33, %cst_20 [1] : vector<8x128xf32> to vector<8xf32>
    %35 = vector.shape_cast %34 : vector<8xf32> to vector<8x1xf32>
    %36 = vector.broadcast %35 : vector<8x1xf32> to vector<8x128xf32>
    %37 = arith.subf %33, %36 : vector<8x128xf32>
    %38 = math.exp %37 : vector<8x128xf32>
    %cst_21 = arith.constant dense<0.000000e+00> : vector<8xf32>
    %39 = vector.multi_reduction <add>, %38, %cst_21 [1] : vector<8x128xf32> to vector<8xf32>
    %40 = vector.shape_cast %39 : vector<8xf32> to vector<8x1xf32>
    %41 = math.log %40 : vector<8x1xf32>
    %42 = vector.broadcast %41 : vector<8x1xf32> to vector<8x128xf32>
    %43 = arith.subf %37, %42 : vector<8x128xf32>
    %44 = vector.extract_strided_slice %43 {offsets = [0, 0], sizes = [8, 10], strides = [1, 1]} : vector<8x128xf32> to vector<8x10xf32>
    %c0_22 = arith.constant 0 : index
    %c0_23 = arith.constant 0 : index
    %45 = vector.load %arg8[%c0_22, %c0_23] : memref<8x10xf32, #tpu.memory_space<vmem>>, vector<8x10xf32>
    tpu.vector_store %arg8[%c0_22, %c0_23], %44 {strides = array<i32>} : memref<8x10xf32, #tpu.memory_space<vmem>>, vector<8x10xf32>,
    return
  }
  func.func @transform_0(%arg0: i32) -> (i32, i32) {
    %c0_i32 = arith.constant 0 : i32
    %c0_i32_0 = arith.constant 0 : i32
    return %arg0, %c0_i32 : i32, i32
  }
  func.func @transform_1(%arg0: i32) -> (i32, i32) {
    %c0_i32 = arith.constant 0 : i32
    %c0_i32_0 = arith.constant 0 : i32
    %c0_i32_1 = arith.constant 0 : i32
    return %c0_i32, %c0_i32_0 : i32, i32
  }
  func.func @transform_2(%arg0: i32) -> (i32, i32) {
    %c0_i32 = arith.constant 0 : i32
    %c0_i32_0 = arith.constant 0 : i32
    %c0_i32_1 = arith.constant 0 : i32
    return %c0_i32, %c0_i32_0 : i32, i32
  }
  func.func @transform_3(%arg0: i32) -> (i32, i32) {
    %c0_i32 = arith.constant 0 : i32
    %c0_i32_0 = arith.constant 0 : i32
    %c0_i32_1 = arith.constant 0 : i32
    return %c0_i32, %c0_i32_0 : i32, i32
  }
  func.func @transform_4(%arg0: i32) -> (i32, i32) {
    %c0_i32 = arith.constant 0 : i32
    %c0_i32_0 = arith.constant 0 : i32
    %c0_i32_1 = arith.constant 0 : i32
    return %c0_i32, %c0_i32_0 : i32, i32
  }
  func.func @transform_5(%arg0: i32) -> (i32, i32) {
    %c0_i32 = arith.constant 0 : i32
    %c0_i32_0 = arith.constant 0 : i32
    %c0_i32_1 = arith.constant 0 : i32
    return %c0_i32, %c0_i32_0 : i32, i32
  }
  func.func @transform_6(%arg0: i32) -> (i32, i32) {
    %c0_i32 = arith.constant 0 : i32
    %c0_i32_0 = arith.constant 0 : i32
    %c0_i32_1 = arith.constant 0 : i32
    return %c0_i32, %c0_i32_0 : i32, i32
  }
  func.func @transform_7(%arg0: i32) -> (i32, i32) {
    %c0_i32 = arith.constant 0 : i32
    %c0_i32_0 = arith.constant 0 : i32
    return %arg0, %c0_i32 : i32, i32
  }
}

</mosaic_0001>

<bundles_post_ra>
// kernel: tpu_custom_call.1
= control target key start
LH: loop header
LB: loop body
LE: loop exit
PB: predicated region body
PF: predicated region fallthrough
CT: control target
= control target key end

     0   :  { %12 = vsyncpa [#allocation3], 0  ;;  %s1753_s0 = inlined_call_operand.hbm [shape: f32[8,784], index: 0, kind: input, shape index: {}]   ;;  %s1754_s1 = inlined_call_operand.hbm [shape: bf16[784,256], index: 1, kind: input, shape index: {}]   ;;  %s1755_s2 = inlined_call_operand.vmem [shape: f32[1,256], index: 2, kind: input, shape index: {}]   ;;  %s1756_s3 = inlined_call_operand.hbm [shape: bf16[256,128], index: 3, kind: input, shape index: {}]   ;;  %s1757_s4 = inlined_call_operand.vmem [shape: f32[1,128], index: 4, kind: input, shape index: {}]   ;;  %s1758_s5 = inlined_call_operand.hbm [shape: bf16[128,128], index: 5, kind: input, shape index: {}]   ;;  %s1759_s6 = inlined_call_operand.vmem [shape: f32[1,128], index: 6, kind: input, shape index: {}]   ;;  %s1760_s7 = inlined_call_operand.hbm [shape: f32[8,10], index: 7, kind: output, shape index: {}]  }
   0x1   :  { %13 = vsyncpa [#allocation6], 0 }
   0x2   :  { %14 = vsyncpa [#allocation9], 0 }
   0x3   :  { %15 = vsyncpa [#allocation4], 0  ;;  %s1665_s24 = smov [#allocation5]  }
   0x4   :  { %s31_s25 = sshll.u32 %s1665_s24, 4  ;;  %s32_s25 = int_to_ptr.vmem [resolvable:$true] %s31_s25 }
   0x5   :  { %s1565_s26 = scalar_lea.vmem %s32_s25, 12544  ;;  %p1570_p1 = scmp.lt.s32.totalorder %s32_s25, %s32_s25 }
   0x6   :  { %p1566_p0 = scmp.ne.s32.totalorder %s32_s25, %s1565_s26  ;;  %p1571_p2 = scmp.lt.s32.totalorder %s1565_s26, %s1565_s26 }
   0x8   :  { %p1572_p3 = por %p1571_p2, %p1570_p1 }
   0xa   :  { %p1573_p4 = pnand %p1572_p3, %p1566_p0 }
   0xc   :  { %1576 = shalt.err (!%p1573_p4)
}
   0xd   :  { %s1666_s27 = smov 128   ;;  %s1667_s28 = smov 8  }
   0xe   :  { %37 = dma.hbm_to_vmem [thread:$0]  %s1754_s1, 12544, %s32_s25, [#allocation6], %s1666_s27, %s1666_s27, %s1667_s28  }
   0xf   :  { %s1668_s8 = smov [#allocation2]   ;;  %s1669_s10 = smov [#allocation7]  }
  0x10   :  { %s22_s9 = sshll.u32 %s1668_s8, 4  ;;  %s45_s11 = sshll.u32 %s1669_s10, 4  ;;  %s23_s9 = int_to_ptr.vmem [resolvable:$true] %s22_s9  ;;  %s46_s11 = int_to_ptr.vmem [resolvable:$true] %s45_s11 }
  0x11   :  { %s1585_s12 = scalar_lea.vmem %s23_s9, 896  ;;  %p1590_p6 = scmp.lt.s32.totalorder %s23_s9, %s23_s9 }
  0x12   :  { %p1586_p5 = scmp.ne.s32.totalorder %s23_s9, %s1585_s12  ;;  %p1591_p7 = scmp.lt.s32.totalorder %s1585_s12, %s1585_s12 }
  0x14   :  { %p1592_p8 = por %p1591_p7, %p1590_p6 }
  0x16   :  { %p1593_p9 = pnand %p1592_p8, %p1586_p5 }
  0x18   :  { %1596 = shalt.err (!%p1593_p9)
}
  0x19   :  { %25 = dma.hbm_to_vmem [thread:$0]  %s1753_s0, 896, %s23_s9, [#allocation3]  }
  0x1a   :  { %s1605_s15 = scalar_lea.vmem %s46_s11, 2048  ;;  %p1610_p11 = scmp.lt.s32.totalorder %s46_s11, %s46_s11 }
  0x1b   :  { %p1606_p10 = scmp.ne.s32.totalorder %s46_s11, %s1605_s15  ;;  %p1611_p12 = scmp.lt.s32.totalorder %s1605_s15, %s1605_s15 }
  0x1d   :  { %p1612_p13 = por %p1611_p12, %p1610_p11 }
  0x1f   :  { %p1613_p0 = pnand %p1612_p13, %p1606_p10 }
  0x21   :  { %1616 = shalt.err (!%p1613_p0)
}
  0x22   :  { %s1670_s1 = smov 64   ;;  %s1671_s16 = smov 4  }
  0x23   :  { %51 = dma.hbm_to_vmem [thread:$0]  %s1756_s3, 2048, %s46_s11, [#allocation6], %s1670_s1, %s1670_s1, %s1671_s16  }
  0x24   :  { %s1672_s19 = smov [#allocation8]  }
  0x25   :  { %s59_s20 = sshll.u32 %s1672_s19, 4  ;;  %s60_s20 = int_to_ptr.vmem [resolvable:$true] %s59_s20 }
  0x26   :  { %s1625_s21 = scalar_lea.vmem %s60_s20, 1024  ;;  %p1630_p2 = scmp.lt.s32.totalorder %s60_s20, %s60_s20 }
  0x27   :  { %p1626_p1 = scmp.ne.s32.totalorder %s60_s20, %s1625_s21  ;;  %p1631_p3 = scmp.lt.s32.totalorder %s1625_s21, %s1625_s21 }
  0x29   :  { %p1632_p4 = por %p1631_p3, %p1630_p2 }
  0x2b   :  { %p1633_p5 = pnand %p1632_p4, %p1626_p1 }
  0x2d   :  { %1636 = shalt.err (!%p1633_p5)
}
  0x2e   :  { %65 = dma.hbm_to_vmem [thread:$0]  %s1758_s5, 1024, %s60_s20, [#allocation9], %s1670_s1, %s1670_s1, %s1671_s16  }
  0x2f   :  { %1657 = dma.done.wait [#allocation3], 896  }
  0x30   :  { %1658 = vsyncadd [#allocation3], 4294966400 }
  0x31   :  { %1659 = dma.done.wait [#allocation6], 14592  }
  0x32   :  { %1660 = vsyncadd [#allocation6], 4294952704 }
  0x33   :  { %1661 = dma.done.wait [#allocation9], 1024  }
  0x34   :  { %1662 = vsyncadd [#allocation9], 4294966272  ;;  %v1382_v0 = vld [vmem:[#allocation5 + $0x74] ss:$8 sps:$4 sm:$0xff]   ;;  %v1384_v1 = vld [vmem:[#allocation5 + $0x70] ss:$8 sps:$4 sm:$0xff]  }
  0x35   :  { %699 = vmatprep.subr.bf16.mxu0 %v1382_v0  ;;  %v1385_v2 = vld [vmem:[#allocation5 + $0x174] ss:$8 sps:$4 sm:$0xff]   ;;  %v1387_v3 = vld [vmem:[#allocation5 + $0x170] ss:$8 sps:$4 sm:$0xff]   ;;  %v1388_v4 = vld [vmem:[#allocation5 + $0x64] ss:$8 sps:$4 sm:$0xff]  }
  0x36   :  { %700 = vmatpush1.bf16.msra.mxu0 %v1384_v1  ;;  %v1390_v5 = vld [vmem:[#allocation5 + $0x60] ss:$8 sps:$4 sm:$0xff]   ;;  %740 = vmatprep.subr.bf16.mxu1 %v1385_v2  ;;  %v1391_v6 = vld [vmem:[#allocation5 + $0x164] ss:$8 sps:$4 sm:$0xff]   ;;  %v1394_v8 = vld [vmem:[#allocation5 + $0x54] ss:$8 sps:$4 sm:$0xff]  }
  0x37   :  { %741 = vmatpush1.bf16.msra.mxu1 %v1387_v3  ;;  %701 = vmatprep.subr.bf16.mxu0 %v1388_v4  ;;  %v1393_v7 = vld [vmem:[#allocation5 + $0x160] ss:$8 sps:$4 sm:$0xff]   ;;  %v1396_v9 = vld [vmem:[#allocation5 + $0x50] ss:$8 sps:$4 sm:$0xff]   ;;  %v1397_v10 = vld [vmem:[#allocation5 + $0x154] ss:$8 sps:$4 sm:$0xff]  }
  0x38   :  { %742 = vmatprep.subr.bf16.mxu1 %v1391_v6  ;;  %v1400_v11 = vld [vmem:[#allocation5 + $0x44] ss:$8 sps:$4 sm:$0xff]   ;;  %v1399_v12 = vld [vmem:[#allocation5 + $0x150] ss:$8 sps:$4 sm:$0xff]   ;;  %v1402_v14 = vld [vmem:[#allocation5 + $0x40] ss:$8 sps:$4 sm:$0xff]  }
  0x39   :  { %v1403_v13 = vld [vmem:[#allocation5 + $0x144] ss:$8 sps:$4 sm:$0xff]   ;;  %v1406_v15 = vld [vmem:[#allocation5 + $0x34] ss:$8 sps:$4 sm:$0xff]   ;;  %v1405_v16 = vld [vmem:[#allocation5 + $0x140] ss:$8 sps:$4 sm:$0xff]  }
  0x3a   :  { %702 = vmatpush1.bf16.msra.mxu0 %v1390_v5  ;;  %v1409_v17 = vld [vmem:[#allocation5 + $0x134] ss:$8 sps:$4 sm:$0xff]   ;;  %v1408_v18 = vld [vmem:[#allocation5 + $0x30] ss:$8 sps:$4 sm:$0xff]   ;;  %v1412_v19 = vld [vmem:[#allocation5 + $0x24] ss:$8 sps:$4 sm:$0xff]  }
  0x3b   :  { %703 = vmatprep.subr.bf16.mxu0 %v1394_v8  ;;  %743 = vmatpush1.bf16.msra.mxu1 %v1393_v7  ;;  %v1411_v20 = vld [vmem:[#allocation5 + $0x130] ss:$8 sps:$4 sm:$0xff]   ;;  %v1415_v21 = vld [vmem:[#allocation5 + $0x124] ss:$8 sps:$4 sm:$0xff]   ;;  %v1414_v22 = vld [vmem:[#allocation5 + $0x20] ss:$8 sps:$4 sm:$0xff]  }
  0x3c   :  { %744 = vmatprep.subr.bf16.mxu1 %v1397_v10  ;;  %v1418_v23 = vld [vmem:[#allocation5 + $0x14] ss:$8 sps:$4 sm:$0xff]   ;;  %v1417_v24 = vld [vmem:[#allocation5 + $0x120] ss:$8 sps:$4 sm:$0xff]   ;;  %v1420_v26 = vld [vmem:[#allocation5 + $0x10] ss:$8 sps:$4 sm:$0xff]  }
  0x3d   :  { %v1421_v25 = vld [vmem:[#allocation5 + $0x114] ss:$8 sps:$4 sm:$0xff]   ;;  %v1424_v27 = vld [vmem:[#allocation5 + $0x4] ss:$8 sps:$4 sm:$0xff]   ;;  %v1423_v28 = vld [vmem:[#allocation5 + $0x110] ss:$8 sps:$4 sm:$0xff]  }
  0x3e   :  { %704 = vmatpush1.bf16.msra.mxu0 %v1396_v9  ;;  %v1427_v29 = vld [vmem:[#allocation5 + $0x104] ss:$8 sps:$4 sm:$0xff]   ;;  %v1426_v30 = vld [vmem:[#allocation5] ss:$8 sps:$4 sm:$0xff]   ;;  %v1430_v31 = vld [vmem:[#allocation5 + $0xf4] ss:$8 sps:$4 sm:$0xff]  }
  0x3f   :  { %705 = vmatprep.subr.bf16.mxu0 %v1400_v11  ;;  %745 = vmatpush1.bf16.msra.mxu1 %v1399_v12  ;;  %v1429_v32 = vld [vmem:[#allocation5 + $0x100] ss:$8 sps:$4 sm:$0xff]   ;;  %v1433_v33 = vld [vmem:[#allocation5 + $0x1f4] ss:$8 sps:$4 sm:$0xff]   ;;  %v1432_v34 = vld [vmem:[#allocation5 + $0xf0] ss:$8 sps:$4 sm:$0xff]  }
  0x40   :  { %746 = vmatprep.subr.bf16.mxu1 %v1403_v13  ;;  %v1436_v35 = vld [vmem:[#allocation5 + $0xe4] ss:$8 sps:$4 sm:$0xff]   ;;  %v1435_v36 = vld [vmem:[#allocation5 + $0x1f0] ss:$8 sps:$4 sm:$0xff]   ;;  %v1438_v38 = vld [vmem:[#allocation5 + $0xe0] ss:$8 sps:$4 sm:$0xff]  }
  0x41   :  { %v1439_v37 = vld [vmem:[#allocation5 + $0x1e4] ss:$8 sps:$4 sm:$0xff]   ;;  %v1442_v39 = vld [vmem:[#allocation5 + $0xd4] ss:$8 sps:$4 sm:$0xff]   ;;  %v1441_v40 = vld [vmem:[#allocation5 + $0x1e0] ss:$8 sps:$4 sm:$0xff]  }
  0x42   :  { %706 = vmatpush1.bf16.msra.mxu0 %v1402_v14  ;;  %v1445_v41 = vld [vmem:[#allocation5 + $0x1d4] ss:$8 sps:$4 sm:$0xff]   ;;  %v1444_v42 = vld [vmem:[#allocation5 + $0xd0] ss:$8 sps:$4 sm:$0xff]   ;;  %v1448_v43 = vld [vmem:[#allocation5 + $0xc4] ss:$8 sps:$4 sm:$0xff]  }
  0x43   :  { %707 = vmatprep.subr.bf16.mxu0 %v1406_v15  ;;  %747 = vmatpush1.bf16.msra.mxu1 %v1405_v16  ;;  %v1447_v44 = vld [vmem:[#allocation5 + $0x1d0] ss:$8 sps:$4 sm:$0xff]   ;;  %v1451_v45 = vld [vmem:[#allocation5 + $0x1c4] ss:$8 sps:$4 sm:$0xff]   ;;  %v1450_v47 = vld [vmem:[#allocation5 + $0xc0] ss:$8 sps:$4 sm:$0xff]  }
  0x44   :  { %748 = vmatprep.subr.bf16.mxu1 %v1409_v17  ;;  %v82_v46 = vld [vmem:[#allocation2 + $0x8] sm:$0xff]  ;;  %v84_v50 = vld [vmem:[#allocation2 + $0x18] sm:$0xff]  ;;  %v81_v4 = vld [vmem:[#allocation2] sm:$0xff]  ;;  %vm695_vm0 = vcmask 130048   ;;  %vm1675_vm3 = vmmov 0   ;;  %vm1175_vm6 = vcmask 80896  }
  0x45   :  { %v89_v48 = vpack.c.bf16 %v82_v46, %v82_v46  ;;  %v1454_v49 = vld [vmem:[#allocation5 + $0xb4] ss:$8 sps:$4 sm:$0xff]   ;;  %v1453_v51 = vld [vmem:[#allocation5 + $0x1c0] ss:$8 sps:$4 sm:$0xff]   ;;  %v91_v52 = vpack.c.bf16 %v84_v50, %v84_v50  ;;  %v1456_v54 = vld [vmem:[#allocation5 + $0xb0] ss:$8 sps:$4 sm:$0xff]   ;;  %v88_v7 = vpack.c.bf16 %v81_v4, %v81_v4 }
  0x46   :  { %708 = vmatpush1.bf16.msra.mxu0 %v1408_v18  ;;  %v1457_v53 = vld [vmem:[#allocation5 + $0x1b4] ss:$8 sps:$4 sm:$0xff]   ;;  %v1460_v55 = vld [vmem:[#allocation5 + $0xa4] ss:$8 sps:$4 sm:$0xff]   ;;  %v1459_v56 = vld [vmem:[#allocation5 + $0x1b0] ss:$8 sps:$4 sm:$0xff]  }
  0x47   :  { %709 = vmatprep.subr.bf16.mxu0 %v1412_v19  ;;  %749 = vmatpush1.bf16.msra.mxu1 %v1411_v20  ;;  %v1463_v57 = vld [vmem:[#allocation5 + $0x1a4] ss:$8 sps:$4 sm:$0xff]   ;;  %v1462_v58 = vld [vmem:[#allocation5 + $0xa0] ss:$8 sps:$4 sm:$0xff]   ;;  %v1466_v59 = vld [vmem:[#allocation5 + $0x94] ss:$8 sps:$4 sm:$0xff]  }
  0x48   :  { %750 = vmatprep.subr.bf16.mxu1 %v1415_v21  ;;  %731 = vmatprep.mubr.bf16.mxu0 %v89_v48  ;;  %v1465_v60 = vld [vmem:[#allocation5 + $0x1a0] ss:$8 sps:$4 sm:$0xff]   ;;  %v1469_v61 = vld [vmem:[#allocation5 + $0x194] ss:$8 sps:$4 sm:$0xff]   ;;  %v1468_v62 = vld [vmem:[#allocation5 + $0x90] ss:$8 sps:$4 sm:$0xff]  }
  0x49   :  { %772 = vmatprep.mubr.bf16.mxu1 %v91_v52  ;;  %v1472_v63 = vld [vmem:[#allocation5 + $0x84] ss:$8 sps:$4 sm:$0xff]   ;;  %v1471_v0 = vld [vmem:[#allocation5 + $0x190] ss:$8 sps:$4 sm:$0xff]   ;;  %v1474_v1 = vld [vmem:[#allocation5 + $0x80] ss:$8 sps:$4 sm:$0xff]  }
  0x4a   :  { %710 = vmatpush1.bf16.msra.mxu0 %v1414_v22  ;;  %v1475_v2 = vld [vmem:[#allocation5 + $0x184] ss:$8 sps:$4 sm:$0xff]   ;;  %v1477_v3 = vld [vmem:[#allocation5 + $0x180] ss:$8 sps:$4 sm:$0xff]   ;;  %v1480_v5 = vld [vmem:[#allocation5 + $0x274] ss:$8 sps:$4 sm:$0xff]  }
  0x4b   :  { %711 = vmatprep.subr.bf16.mxu0 %v1418_v23  ;;  %751 = vmatpush1.bf16.msra.mxu1 %v1417_v24  ;;  %v83_v6 = vld [vmem:[#allocation2 + $0x10] sm:$0xff]  ;;  %v1483_v9 = vld [vmem:[#allocation5 + $0x264] ss:$8 sps:$4 sm:$0xff]   ;;  %v1523_v11 = vld [vmem:[#allocation5 + $0x300] ss:$8 sps:$4 sm:$0xff]   ;;  %v1673_v19 = vmov 0  }
  0x4c   :  { %752 = vmatprep.subr.bf16.mxu1 %v1421_v25  ;;  %v1478_v8 = vld [vmem:[#allocation5 + $0x270] ss:$8 sps:$4 sm:$0xff]   ;;  %v90_v10 = vpack.c.bf16 %v83_v6, %v83_v6  ;;  %v1525_v12 = vld [vmem:[#allocation5 + $0x304] ss:$8 sps:$4 sm:$0xff]   ;;  %v1481_v13 = vld [vmem:[#allocation5 + $0x260] ss:$8 sps:$4 sm:$0xff]  }
  0x4d   :  { %v1486_v14 = vld [vmem:[#allocation5 + $0x254] ss:$8 sps:$4 sm:$0xff]   ;;  %v1484_v18 = vld [vmem:[#allocation5 + $0x250] ss:$8 sps:$4 sm:$0xff]   ;;  %v1489_v20 = vld [vmem:[#allocation5 + $0x244] ss:$8 sps:$4 sm:$0xff]  }
  0x4e   :  { %712 = vmatpush1.bf16.msra.mxu0 %v1420_v26  ;;  %v87_v15 = vld [vmem:[#allocation2 + $0x30] sm:$0xff]  ;;  %v86_v16 = vld [vmem:[#allocation2 + $0x28] sm:$0xff]  ;;  %v1487_v22 = vld [vmem:[#allocation5 + $0x240] ss:$8 sps:$4 sm:$0xff]  }
  0x4f   :  { %713 = vmatprep.subr.bf16.mxu0 %v1424_v27  ;;  %753 = vmatpush1.bf16.msra.mxu1 %v1423_v28  ;;  %v93_v17 = vpack.c.bf16 %v86_v16, %v86_v16  ;;  %v94_v21 = vpack.c.bf16 %v87_v15, %v87_v15  ;;  %v1492_v23 = vld [vmem:[#allocation5 + $0x234] ss:$8 sps:$4 sm:$0xff]   ;;  %v1490_v24 = vld [vmem:[#allocation5 + $0x230] ss:$8 sps:$4 sm:$0xff]   ;;  %v1495_v25 = vld [vmem:[#allocation5 + $0x224] ss:$8 sps:$4 sm:$0xff]  }
  0x50   :  { %754 = vmatprep.subr.bf16.mxu1 %v1427_v29  ;;  %v1493_v26 = vld [vmem:[#allocation5 + $0x220] ss:$8 sps:$4 sm:$0xff]   ;;  %v1498_v27 = vld [vmem:[#allocation5 + $0x214] ss:$8 sps:$4 sm:$0xff]   ;;  %v1496_v28 = vld [vmem:[#allocation5 + $0x210] ss:$8 sps:$4 sm:$0xff]  }
  0x51   :  { %v1501_v29 = vld [vmem:[#allocation5 + $0x204] ss:$8 sps:$4 sm:$0xff]   ;;  %v1526_v46 = vld [vmem:[#allocation5 + $0x280] ss:$8 sps:$4 sm:$0xff]  }
  0x52   :  { %714 = vmatpush1.bf16.msra.mxu0 %v1426_v30  ;;  %v1499_v30 = vld [vmem:[#allocation5 + $0x200] ss:$8 sps:$4 sm:$0xff]  }
  0x53   :  { %715 = vmatprep.subr.bf16.mxu0 %v1430_v31  ;;  %755 = vmatpush1.bf16.msra.mxu1 %v1429_v32  ;;  %v1504_v31 = vld [vmem:[#allocation5 + $0x2f4] ss:$8 sps:$4 sm:$0xff]   ;;  %v1502_v32 = vld [vmem:[#allocation5 + $0x2f0] ss:$8 sps:$4 sm:$0xff]   ;;  %v1530_v50 = vld [vmem:[#allocation7 + $0x38] sm:$0xff]  }
  0x54   :  { %756 = vmatprep.subr.bf16.mxu1 %v1433_v33  ;;  %v1507_v33 = vld [vmem:[#allocation5 + $0x2e4] ss:$8 sps:$4 sm:$0xff]  }
  0x55   :  { %v1532_v52 = vld [vmem:[#allocation7 + $0x30] sm:$0xff]  }
  0x56   :  { %716 = vmatpush2.bf16.msra.mxu0 %v1432_v34  ;;  %v1505_v34 = vld [vmem:[#allocation5 + $0x2e0] ss:$8 sps:$4 sm:$0xff]  }
  0x57   :  { %717 = vmatprep.subr.bf16.mxu0 %v1436_v35  ;;  %757 = vmatpush2.bf16.msra.mxu1 %v1435_v36  ;;  %v1510_v35 = vld [vmem:[#allocation5 + $0x2d4] ss:$8 sps:$4 sm:$0xff]   ;;  %v1508_v36 = vld [vmem:[#allocation5 + $0x2d0] ss:$8 sps:$4 sm:$0xff]  }
  0x58   :  { %758 = vmatprep.subr.bf16.mxu1 %v1439_v37  ;;  %v1513_v37 = vld [vmem:[#allocation5 + $0x2c4] ss:$8 sps:$4 sm:$0xff]  }
  0x5a   :  { %718 = vmatpush2.bf16.msra.mxu0 %v1438_v38  ;;  %v1511_v38 = vld [vmem:[#allocation5 + $0x2c0] ss:$8 sps:$4 sm:$0xff]  }
  0x5b   :  { %719 = vmatprep.subr.bf16.mxu0 %v1442_v39  ;;  %759 = vmatpush2.bf16.msra.mxu1 %v1441_v40  ;;  %v1516_v39 = vld [vmem:[#allocation5 + $0x2b4] ss:$8 sps:$4 sm:$0xff]   ;;  %v1514_v40 = vld [vmem:[#allocation5 + $0x2b0] ss:$8 sps:$4 sm:$0xff]  }
  0x5c   :  { %760 = vmatprep.subr.bf16.mxu1 %v1445_v41  ;;  %v1519_v41 = vld [vmem:[#allocation5 + $0x2a4] ss:$8 sps:$4 sm:$0xff]  }
  0x5e   :  { %720 = vmatpush2.bf16.msra.mxu0 %v1444_v42  ;;  %v1517_v42 = vld [vmem:[#allocation5 + $0x2a0] ss:$8 sps:$4 sm:$0xff]  }
  0x5f   :  { %721 = vmatprep.subr.bf16.mxu0 %v1448_v43  ;;  %761 = vmatpush2.bf16.msra.mxu1 %v1447_v44  ;;  %v1522_v43 = vld [vmem:[#allocation5 + $0x294] ss:$8 sps:$4 sm:$0xff]   ;;  %v1520_v44 = vld [vmem:[#allocation5 + $0x290] ss:$8 sps:$4 sm:$0xff]  }
  0x60   :  { %762 = vmatprep.subr.bf16.mxu1 %v1451_v45  ;;  %v1528_v45 = vld [vmem:[#allocation5 + $0x284] ss:$8 sps:$4 sm:$0xff]  }
  0x62   :  { %722 = vmatpush2.bf16.msra.mxu0 %v1450_v47  ;;  %v85_v47 = vld [vmem:[#allocation2 + $0x20] sm:$0xff] }
  0x63   :  { %723 = vmatprep.subr.bf16.mxu0 %v1454_v49  ;;  %763 = vmatpush2.bf16.msra.mxu1 %v1453_v51  ;;  %v92_v48 = vpack.c.bf16 %v85_v47, %v85_v47  ;;  %v1529_v49 = vld [vmem:[#allocation7 + $0x78] sm:$0xff]   ;;  %v1531_v51 = vld [vmem:[#allocation7 + $0x70] sm:$0xff]  }
  0x64   :  { %764 = vmatprep.subr.bf16.mxu1 %v1457_v53  ;;  %v1533_v53 = vld [vmem:[#allocation7 + $0x68] sm:$0xff]  }
  0x66   :  { %724 = vmatpush2.bf16.msra.mxu0 %v1456_v54  ;;  %v1534_v54 = vld [vmem:[#allocation7 + $0x28] sm:$0xff]  }
  0x67   :  { %725 = vmatprep.subr.bf16.mxu0 %v1460_v55  ;;  %765 = vmatpush2.bf16.msra.mxu1 %v1459_v56  ;;  %v1535_v55 = vld [vmem:[#allocation7 + $0x60] sm:$0xff]  }
  0x68   :  { %766 = vmatprep.subr.bf16.mxu1 %v1463_v57  ;;  %v1536_v56 = vld [vmem:[#allocation7 + $0x20] sm:$0xff]   ;;  %v1537_v57 = vld [vmem:[#allocation7 + $0x58] sm:$0xff]  }
  0x6a   :  { %726 = vmatpush2.bf16.msra.mxu0 %v1462_v58  ;;  %v1538_v58 = vld [vmem:[#allocation7 + $0x18] sm:$0xff]  }
  0x6b   :  { %727 = vmatprep.subr.bf16.mxu0 %v1466_v59  ;;  %767 = vmatpush2.bf16.msra.mxu1 %v1465_v60  ;;  %v1539_v59 = vld [vmem:[#allocation7 + $0x50] sm:$0xff]  }
  0x6c   :  { %768 = vmatprep.subr.bf16.mxu1 %v1469_v61  ;;  %v1540_v60 = vld [vmem:[#allocation7 + $0x10] sm:$0xff]   ;;  %v1541_v61 = vld [vmem:[#allocation7 + $0x48] sm:$0xff]  }
  0x6e   :  { %728 = vmatpush2.bf16.msra.mxu0 %v1468_v62  ;;  %v1542_v62 = vld [vmem:[#allocation7 + $0x8] sm:$0xff]  }
  0x6f   :  { %729 = vmatprep.subr.bf16.mxu0 %v1472_v63  ;;  %769 = vmatpush2.bf16.msra.mxu1 %v1471_v0  ;;  %v1543_v63 = vld [vmem:[#allocation7 + $0x40] sm:$0xff]  }
  0x70   :  { %770 = vmatprep.subr.bf16.mxu1 %v1475_v2  ;;  %v1544_v0 = vld [vmem:[#allocation7] sm:$0xff]  }
  0x72   :  { %730 = vmatpush2.bf16.msra.mxu0 %v1474_v1  ;;  %v1674_v1 = vmov 0.0  }
  0x73   :  { %781 = vmatprep.subr.bf16.mxu0 %v1480_v5  ;;  %771 = vmatpush2.bf16.msra.mxu1 %v1477_v3 }
  0x74   :  { %836 = vmatprep.subr.bf16.mxu1 %v1525_v12 }
  0x75   :  { %732 = vmatmul.mubr.bf16.vlgmr.msra.gmra.mxu0 %v88_v7 }
  0x76   :  { %782 = vmatpush1.bf16.msra.mxu0 %v1478_v8  ;;  %773 = vmatmul.mubr.bf16.vlgmr.msra.gmra.mxu1 %v90_v10 }
  0x77   :  { %783 = vmatprep.subr.bf16.mxu0 %v1483_v9  ;;  %837 = vmatpush1.bf16.msra.mxu1 %v1523_v11 }
  0x78   :  { %854 = vmatprep.mubr.bf16.mxu1 %v1673_v19  ;;  %813 = vmatprep.mubr.bf16.mxu0 %v93_v17  ;;  %v193_v17 = vld [vmem:[%s1755_s2] sm:$0x3] }
  0x79   :  { %1319 = vmatprep.subr.bf16.mxu1 %v1529_v49 }
  0x7a   :  { %784 = vmatpush1.bf16.msra.mxu0 %v1481_v13 }
  0x7b   :  { %785 = vmatprep.subr.bf16.mxu0 %v1486_v14  ;;  %v195_v14 = vlaneseq }
  0x7d   :  { %v196_v15 = vshrl.u32 %v195_v14, 7 }
  0x7e   :  { %786 = vmatpush1.bf16.msra.mxu0 %v1484_v18  ;;  %1292 = vmatmul.mubr.msk.bf16.vlgmr.msra.gmra.mxu1 %vm695_vm0, %v94_v21 }
  0x7f   :  { %787 = vmatprep.subr.bf16.mxu0 %v1489_v20  ;;  %1320 = vmatpush3.bf16.msra.mxu1 %v1530_v50  ;;  %v197_v16 = vsub.s32 0, %v196_v15  ;;  %v201_v18 = vsub.s32 1, %v196_v15 }
  0x80   :  { %1321 = vmatprep.subr.bf16.mxu1 %v1531_v51 }
  0x81   :  { %v198_v19 = vrot.slane %v193_v17, %v197_v16  ;;  %v202_v20 = vrot.slane %v193_v17, %v201_v18 }
  0x82   :  { %788 = vmatpush1.bf16.msra.mxu0 %v1487_v22 }
  0x83   :  { %789 = vmatprep.subr.bf16.mxu0 %v1492_v23  ;;  %1322 = vmatpush3.bf16.msra.mxu1 %v1532_v52 }
  0x84   :  { %1323 = vmatprep.subr.bf16.mxu1 %v1533_v53 }
  0x86   :  { %790 = vmatpush1.bf16.msra.mxu0 %v1490_v24 }
  0x87   :  { %791 = vmatprep.subr.bf16.mxu0 %v1495_v25  ;;  %1324 = vmatpush3.bf16.msra.mxu1 %v1534_v54 }
  0x88   :  { %1325 = vmatprep.subr.bf16.mxu1 %v1535_v55 }
  0x8a   :  { %792 = vmatpush1.bf16.msra.mxu0 %v1493_v26 }
  0x8b   :  { %793 = vmatprep.subr.bf16.mxu0 %v1498_v27  ;;  %1326 = vmatpush3.bf16.msra.mxu1 %v1536_v56 }
  0x8c   :  { %1327 = vmatprep.subr.bf16.mxu1 %v1537_v57  ;;  %v1162_v57 = vand.u32 127, %v195_v14 }
  0x8e   :  { %794 = vmatpush1.bf16.msra.mxu0 %v1496_v28  ;;  %vm1163_vm5 = vcmp.lt.s32.totalorder %v1162_v57, 10 }
  0x8f   :  { %795 = vmatprep.subr.bf16.mxu0 %v1501_v29  ;;  %1328 = vmatpush3.bf16.msra.mxu1 %v1538_v58  ;;  %v1310_v58 = vld [vmem:[%s1759_s6] ss:$0 sm:$0xff] }
  0x90   :  { %1329 = vmatprep.subr.bf16.mxu1 %v1539_v59 }
  0x92   :  { %796 = vmatpush1.bf16.msra.mxu0 %v1499_v30 }
  0x93   :  { %797 = vmatprep.subr.bf16.mxu0 %v1504_v31  ;;  %1330 = vmatpush3.bf16.msra.mxu1 %v1540_v60 }
  0x94   :  { %1331 = vmatprep.subr.bf16.mxu1 %v1541_v61 }
  0x96   :  { %798 = vmatpush2.bf16.msra.mxu0 %v1502_v32 }
  0x97   :  { %799 = vmatprep.subr.bf16.mxu0 %v1507_v33  ;;  %1332 = vmatpush3.bf16.msra.mxu1 %v1542_v62 }
  0x98   :  { %1333 = vmatprep.subr.bf16.mxu1 %v1543_v63 }
  0x9a   :  { %800 = vmatpush2.bf16.msra.mxu0 %v1505_v34 }
  0x9b   :  { %801 = vmatprep.subr.bf16.mxu0 %v1510_v35  ;;  %1334 = vmatpush3.bf16.msra.mxu1 %v1544_v0 }
  0x9c   :  { %1350 = vmatprep.subr.bf16.mxu1 %v1674_v1 }
  0x9e   :  { %802 = vmatpush2.bf16.msra.mxu0 %v1508_v36 }
  0x9f   :  { %803 = vmatprep.subr.bf16.mxu0 %v1513_v37 }
  0xa2   :  { %804 = vmatpush2.bf16.msra.mxu0 %v1511_v38  ;;  %v1545_v38 = vld [vmem:[#allocation8 + $0x38] sm:$0xff]  }
  0xa3   :  { %805 = vmatprep.subr.bf16.mxu0 %v1516_v39 }
  0xa6   :  { %806 = vmatpush2.bf16.msra.mxu0 %v1514_v40  ;;  %v1546_v40 = vld [vmem:[#allocation8 + $0x30] sm:$0xff]  }
  0xa7   :  { %807 = vmatprep.subr.bf16.mxu0 %v1519_v41  ;;  %v1547_v41 = vld [vmem:[#allocation8 + $0x28] sm:$0xff]  }
  0xaa   :  { %808 = vmatpush2.bf16.msra.mxu0 %v1517_v42  ;;  %v1548_v42 = vld [vmem:[#allocation8 + $0x20] sm:$0xff]  }
  0xab   :  { %809 = vmatprep.subr.bf16.mxu0 %v1522_v43  ;;  %v1549_v43 = vld [vmem:[#allocation8 + $0x18] sm:$0xff]  }
  0xae   :  { %810 = vmatpush2.bf16.msra.mxu0 %v1520_v44  ;;  %v1550_v44 = vld [vmem:[#allocation8 + $0x10] sm:$0xff]  }
  0xaf   :  { %811 = vmatprep.subr.bf16.mxu0 %v1528_v45  ;;  %v1551_v45 = vld [vmem:[#allocation8 + $0x8] sm:$0xff]  }
  0xb2   :  { %812 = vmatpush2.bf16.msra.mxu0 %v1526_v46  ;;  %v1552_v46 = vld [vmem:[#allocation8] sm:$0xff]  }
  0xb5   :  { %814 = vmatmul.mubr.bf16.vlgmr.msra.gmra.mxu0 %v92_v48  ;;  %v1293_v48 = vld [vmem:[%s1757_s4] ss:$0 sm:$0xff]  ;;  %s1676_s4 = smov [#allocation10]  }
  0xb6   :  { %s1183_s26 = sshll.u32 %s1676_s4, 4  ;;  %s1184_s26 = int_to_ptr.vmem [resolvable:$true] %s1183_s26 }
  0xb7   :  { %s1637_s6 = scalar_lea.vmem %s1184_s26, 128  ;;  %p1642_p7 = scmp.lt.s32.totalorder %s1184_s26, %s1184_s26 }
  0xb8   :  { %p1638_p6 = scmp.ne.s32.totalorder %s1184_s26, %s1637_s6  ;;  %p1643_p8 = scmp.lt.s32.totalorder %s1637_s6, %s1637_s6 }
  0xba   :  { %p1644_p9 = por %p1643_p8, %p1642_p7 }
  0xbc   :  { %p1645_p10 = pnand %p1644_p9, %p1638_p6 }
 0x135   :  { %v733_v2 = vpop.f32.mrf.mxu0 }
 0x136   :  { %v774_v4 = vpop.f32.mrf.mxu1  ;;  %v734_v21 = vadd.f32 %v733_v2, %v198_v19 }
 0x137   :  { %v735_v3 = vpop.f32.mrf.mxu0 }
 0x138   :  { %v776_v6 = vpop.f32.mrf.mxu1  ;;  %v736_v22 = vadd.f32 %v735_v3, %v202_v20  ;;  %v775_v23 = vadd.f32 %v774_v4, %v734_v21 }
 0x139   :  { %v737_v5 = vpop.f32.mrf.mxu0 }
 0x13a   :  { %v778_v8 = vpop.f32.mrf.mxu1  ;;  %v777_v25 = vadd.f32 %v776_v6, %v736_v22 }
 0x13b   :  { %v738_v7 = vpop.f32.mrf.mxu0 }
 0x13c   :  { %v779_v9 = vpop.f32.mrf.mxu1 }
 0x13e   :  { %v856_v10 = vpop.f32.mrf.mxu1 }
 0x140   :  { %v858_v11 = vpop.f32.mrf.mxu1 }
 0x142   :  { %v860_v12 = vpop.f32.mrf.mxu1 }
 0x144   :  { %v861_v13 = vpop.f32.mrf.mxu1 }
 0x175   :  { %v815_v24 = vpop.f32.mrf.mxu0 }
 0x176   :  { %v816_v26 = vadd.f32 %v815_v24, %v775_v23 }
 0x177   :  { %v817_v27 = vpop.f32.mrf.mxu0 }
 0x178   :  { %v857_v28 = vadd.f32 %v856_v10, %v816_v26  ;;  %v818_v29 = vadd.f32 %v817_v27, %v777_v25 }
 0x179   :  { %v819_v30 = vpop.f32.mrf.mxu0 }
 0x17a   :  { %vm863_vm1 = vcmp.gt.f32.partialorder %v857_v28, 0.0  ;;  %v865_v31 = vmul.f32 0.01, %v857_v28  ;;  %v859_v32 = vadd.f32 %v858_v11, %v818_v29 }
 0x17b   :  { %v820_v33 = vpop.f32.mrf.mxu0 }
 0x17c   :  { %v866_v34 = vmul.f32 0.01, %v859_v32  ;;  %vm864_vm2 = vcmp.gt.f32.partialorder %v859_v32, 0.0  ;;  %v867_v35 = vsel %vm863_vm1, %v857_v28, %v865_v31 }
 0x17d   :  { %v869_v39 = vpack.c.bf16 %v867_v35, %v867_v35 }
 0x17e   :  { %v868_v36 = vsel %vm864_vm2, %v859_v32, %v866_v34 }
 0x17f   :  { %v870_v37 = vpack.c.bf16 %v868_v36, %v868_v36 }
 0x181   :  { %1038 = vmatprep.mubr.bf16.mxu1 %v870_v37 }
 0x182   :  { %1039 = vmatmul.mubr.bf16.vlgmr.msra.gmra.mxu1 %v869_v39 }
 0x183   :  { %1351 = vmatpush3.bf16.msra.mxu1 %v1545_v38  ;;  %1366 = vmatprep.mubr.msk.bf16.mxu1 %vm1675_vm3, %v1674_v1 }
 0x184   :  { %1352 = vmatprep.subr.bf16.mxu1 %v1674_v1 }
 0x187   :  { %1353 = vmatpush3.bf16.msra.mxu1 %v1546_v40 }
 0x188   :  { %1354 = vmatprep.subr.bf16.mxu1 %v1674_v1 }
 0x18b   :  { %1355 = vmatpush3.bf16.msra.mxu1 %v1547_v41 }
 0x18c   :  { %1356 = vmatprep.subr.bf16.mxu1 %v1674_v1 }
 0x18f   :  { %1357 = vmatpush3.bf16.msra.mxu1 %v1548_v42 }
 0x190   :  { %1358 = vmatprep.subr.bf16.mxu1 %v1674_v1 }
 0x193   :  { %1359 = vmatpush3.bf16.msra.mxu1 %v1549_v43 }
 0x194   :  { %1360 = vmatprep.subr.bf16.mxu1 %v1674_v1 }
 0x197   :  { %1361 = vmatpush3.bf16.msra.mxu1 %v1550_v44 }
 0x198   :  { %1362 = vmatprep.subr.bf16.mxu1 %v1674_v1 }
 0x19b   :  { %1363 = vmatpush3.bf16.msra.mxu1 %v1551_v45 }
 0x19c   :  { %1364 = vmatprep.subr.bf16.mxu1 %v1674_v1 }
 0x19f   :  { %1365 = vmatpush3.bf16.msra.mxu1 %v1552_v46 }
 0x242   :  { %v1335_v47 = vpop.f32.mrf.mxu1 }
 0x244   :  { %v1336_v49 = vpop.f32.mrf.mxu1 }
 0x245   :  { %v1337_v50 = vadd.f32 %v1336_v49, %v1335_v47 }
 0x246   :  { %v1338_v51 = vpop.f32.mrf.mxu1 }
 0x247   :  { %v1041_v52 = vadd.f32 %v1337_v50, %v1293_v48 }
 0x248   :  { %v1339_v53 = vpop.f32.mrf.mxu1 }
 0x249   :  { %vm1046_vm4 = vcmp.gt.f32.partialorder %v1041_v52, 0.0  ;;  %v1047_v54 = vmul.f32 0.01, %v1041_v52 }
 0x24b   :  { %v1048_v55 = vsel %vm1046_vm4, %v1041_v52, %v1047_v54 }
 0x24c   :  { %v1049_v56 = vpack.c.bf16 %v1048_v55, %v1048_v55 }
 0x24e   :  { %1367 = vmatmul.mubr.bf16.vlgmr.msra.gmra.mxu1 %v1049_v56 }
 0x30e   :  { %v1155_v59 = vpop.f32.mrf.mxu1 }
 0x30f   :  { %v1156_v60 = vadd.f32 %v1310_v58, %v1155_v59 }
 0x310   :  { %v1368_v61 = vpop.f32.mrf.mxu1 }
 0x311   :  { %v1164_v62 = vsel %vm1163_vm5, %v1156_v60, -1e+30 }
 0x312   :  { %1165 = vmax.xlane.f32.xlu0 %v1164_v62  ;;  %v1158_v63 = vpop.f32.mrf.mxu1 }
 0x314   :  { %v1369_v0 = vpop.f32.mrf.mxu1 }
 0x39b   :  { %v1166_v1 = vpop.xlane.xlu0 %1165 }
 0x39c   :  { %v1167_v2 = vsub.f32 %v1164_v62, %v1166_v1 }
 0x39e   :  { %v1168_v3 = vmul.f32 1.442695, %v1167_v2 }
 0x3a0   :  { %1553 = vpow2.f32 %v1168_v3 }
 0x3ad   :  { %v1554_v4 = vpop.eup %1553 }
 0x3ae   :  { %1170 = vadd.xlane.f32.xlu0 %v1554_v4 }
 0x437   :  { %v1171_v5 = vpop.xlane.xlu0 %1170 }
 0x438   :  { %1555 = vlog2.f32 %v1171_v5 }
 0x445   :  { %v1556_v6 = vpop.eup %1555 }
 0x446   :  { %v1173_v7 = vmul.f32 0.6931472, %v1556_v6 }
 0x448   :  { %v1174_v8 = vsub.f32 %v1167_v2, %v1173_v7 }
 0x44a   :  { %1176 = vst.msk [vmem:[#allocation10] sm:$0xff] %vm1175_vm6, %v1174_v8 }
 0x44b   :  { %1648 = shalt.err (!%p1645_p10)
}
 0x44c   :  { %1186 = dma.vmem_to_hbm [thread:$0]  %s1184_s26, 128, %s1760_s7, [#allocation4]  }
 0x44d   :  { %1663 = dma.done.wait [#allocation4], 128  }
 0x44e   :  { %1664 = vsyncadd [#allocation4], 4294967168 }
 0x44f   :  { %1190 = vsyncpa [#allocation3], 1 }
 0x450   :  { %1191 = vsyncpa [#allocation6], 1 }
 0x451   :  { %1192 = vsyncpa [#allocation9], 1 }
 0x452   :  { %1193 = vsyncpa [#allocation4], 1 }

</bundles_post_ra>
